<compile_context>
chip_gen: v5e
topology: v5e:2x2
jax: 0.10.0
libtpu: 0.0.40
codegen_flags: <defaults>
</compile_context>

<pallas_src>
import jax
import jax.numpy as jnp
from jax.experimental import pallas as pl
from jax.experimental.pallas import tpu as pltpu


_CHUNK = 128   # edges processed per inner step == lane width; bounds vreg pressure


def _dedicom_kernel(rp_ref, row_ref, col_ref, o_ref):
    rp = rp_ref[...]                                   # (D, D) folded R', resident in VMEM
    te = row_ref.shape[0]
    n_chunks = te // _CHUNK

    # Constants for the sublane->lane transpose of each 128-edge score column:
    #   s_row = ones(1,128) @ (s_col * I_128)          (exact; MXU is idle anyway)
    rr = jax.lax.broadcasted_iota(jnp.int32, (_CHUNK, _CHUNK), 0)
    cc = jax.lax.broadcasted_iota(jnp.int32, (_CHUNK, _CHUNK), 1)
    eye = (rr == cc).astype(jnp.float32)               # (128, 128)
    ones_row = jnp.ones((1, _CHUNK), jnp.float32)      # (1, 128)

    for c in range(n_chunks):                          # static unroll over sub-chunks
        sl = pl.ds(c * _CHUNK, _CHUNK)
        row = row_ref[sl, :]                           # (128, D) bf16 stream
        col = col_ref[sl, :].astype(jnp.float32)       # (128, D) f32 (v5e-safe elementwise)
        prod = jnp.dot(row, rp,                        # (128, D) f32, MXU (bf16 x bf16)
                       preferred_element_type=jnp.float32)
        s_col = jnp.sum(prod * col, axis=1, keepdims=True)          # (128, 1) scores
        s_row = jnp.dot(ones_row, s_col * eye,                      # (1, 128) lane-dense
                        preferred_element_type=jnp.float32)
        o_ref[0, pl.ds(c, 1), :] = s_row


def _round_up(x, m):
    return ((x + m - 1) // m) * m


def dedicom_pallas(d_k, R, row_emb, col_emb, *, te=1024):
    """Per-edge DEDICOM scores.

    d_k: [D] (f32), R: [D, D] (f32), row_emb/col_emb: [E, D] (bf16 or f32) -> [E] f32.
    """
    E, D = row_emb.shape
    assert col_emb.shape == (E, D)
    cdtype = row_emb.dtype

    # Fold the per-relation-subtype diagonal into the global matrix once (O(D^2)).
    d32 = d_k.astype(jnp.float32)
    rp = (d32[:, None] * R.astype(jnp.float32) * d32[None, :]).astype(cdtype)

    # Tile selection: as large as useful, multiple of 128, but keep >= 4 tiles when
    # possible so the "parallel" grid is shared across v7x's two TensorCores.
    e_pad = _round_up(max(E, 1), _CHUNK)
    te = max(_CHUNK, min(int(te), e_pad))
    te = (te // _CHUNK) * _CHUNK
    while te > _CHUNK and pl.cdiv(E, te) < 4:
        te = max(_CHUNK, ((te // 2) // _CHUNK) * _CHUNK)

    num_tiles = pl.cdiv(E, te)
    rows_per_tile = te // _CHUNK

    out = pl.pallas_call(
        _dedicom_kernel,
        out_shape=jax.ShapeDtypeStruct((num_tiles, rows_per_tile, _CHUNK), jnp.float32),
        grid_spec=pltpu.PrefetchScalarGridSpec(
            num_scalar_prefetch=0,
            grid=(num_tiles,),
            in_specs=[
                pl.BlockSpec((D, D), lambda i: (0, 0)),     # folded R' (resident)
                pl.BlockSpec((te, D), lambda i: (i, 0)),    # row-embedding tile (bf16)
                pl.BlockSpec((te, D), lambda i: (i, 0)),    # col-embedding tile (bf16)
            ],
            out_specs=pl.BlockSpec((1, rows_per_tile, _CHUNK), lambda i: (i, 0, 0)),
        ),
        compiler_params=pltpu.CompilerParams(dimension_semantics=("parallel",)),
    )(rp, row_emb, col_emb)
    # Padded rows (E % te != 0) produce garbage scores that are sliced away here.
    return out.reshape(-1)[:E]


class TDDecoderPallas:
    """JAX/Pallas port of TDDecoder: one DEDICOM layer per relation type."""

    def __init__(self, rt_num_dict_s2, hid_dim, key, compute_dtype=jnp.bfloat16):
        self.hid_dim = hid_dim
        self.compute_dtype = compute_dtype
        self.params = {}
        for idx, (rel_type, rt_num) in enumerate(sorted(rt_num_dict_s2.items())):
            k1, k2 = jax.random.split(jax.random.fold_in(key, idx))
            # deterministic glorot-ish init (synthetic weights, not a checkpoint)
            local_variation = jax.random.normal(k1, (rt_num, hid_dim), jnp.float32) \
                * (1.0 / jnp.sqrt(hid_dim))
            global_interaction = jax.random.normal(k2, (hid_dim, hid_dim), jnp.float32) \
                * (1.0 / jnp.sqrt(hid_dim))
            self.params[rel_type] = (local_variation, global_interaction)

    def __call__(self, inputs):
        rel_type, rt_k, edges_row, edges_col, embeds, tag = inputs
        cdt = self.compute_dtype
        # glue: cast tables to the compute dtype once, gather in plain JAX
        embeds_row = embeds[rel_type[0]].astype(cdt)
        embeds_col = embeds[rel_type[1]].astype(cdt)
        edges_embeds_row = embeds_row[edges_row]          # [E, D] bf16
        edges_embeds_col = embeds_col[edges_col]          # [E, D] bf16
        local_variation, global_interaction = self.params[rel_type]
        d_k = local_variation[rt_k]                       # [D]
        return dedicom_pallas(d_k, global_interaction,
                              edges_embeds_row, edges_embeds_col)


if __name__ == "__main__":
    key = jax.random.PRNGKey(0)
    D = 32            # args.hid_dims[-1]
    N0, N1 = 64, 48   # node counts for the two node types
    E = 2000          # number of edges queried (exercises a partial last tile)
    rt_num_dict_s2 = {(0, 0): 3, (0, 1): 2}   # dp.rt_num_dict_s2

    k_emb0, k_emb1, k_row, k_col, k_params = jax.random.split(key, 5)
    embeds = {
        0: jax.random.normal(k_emb0, (N0, D), jnp.float32),
        1: jax.random.normal(k_emb1, (N1, D), jnp.float32),
    }
    edges_row = jax.random.randint(k_row, (E,), 0, N0)
    edges_col = jax.random.randint(k_col, (E,), 0, N1)

    decoder = TDDecoderPallas(rt_num_dict_s2, D, k_params)

    rel_type, rt_k, tag = (0, 1), 1, "train"
    preds = decoder((rel_type, rt_k, edges_row, edges_col, embeds, tag))
    preds = jax.block_until_ready(preds)
    assert preds.shape == (E,)

    # --- reference checks ------------------------------------------------------
    local_variation, global_interaction = decoder.params[rel_type]
    d = local_variation[rt_k]
    hi = jax.lax.Precision.HIGHEST

    # (1) exact-path reference: same bf16 rounding as the kernel, f32 math
    rows_q = embeds[rel_type[0]].astype(jnp.bfloat16)[edges_row].astype(jnp.float32)
    cols_q = embeds[rel_type[1]].astype(jnp.bfloat16)[edges_col].astype(jnp.float32)
    rp_q = (d[:, None] * global_interaction * d[None, :]) \
        .astype(jnp.bfloat16).astype(jnp.float32)
    ref_q = jnp.sum(jnp.matmul(rows_q, rp_q, precision=hi) * cols_q, axis=1)
    assert jnp.allclose(preds, ref_q, atol=1e-2, rtol=1e-2), \
        f"max err vs bf16 reference {jnp.max(jnp.abs(preds - ref_q))}"

    # (2) semantic reference: full-f32 DEDICOM formula (looser: bf16 quantization)
    row_f = embeds[rel_type[0]][edges_row]
    col_f = embeds[rel_type[1]][edges_col]
    ref32 = jnp.sum(jnp.matmul(row_f * d, global_interaction, precision=hi)
                    * (col_f * d), axis=1)
    assert jnp.allclose(preds, ref32, atol=5e-2, rtol=5e-2), \
        f"max err vs f32 reference {jnp.max(jnp.abs(preds - ref32))}"

    print("KERNEL_OK")
</pallas_src>

<mosaic_0001>
module attributes {stable_mosaic.version = 11 : i64} {
  func.func @_dedicom_kernel(%arg0: i32, %arg1: memref<32x32xbf16, #tpu.memory_space<vmem>>, %arg2: memref<512x32xbf16, #tpu.memory_space<vmem>>, %arg3: memref<512x32xbf16, #tpu.memory_space<vmem>>, %arg4: memref<1x4x128xf32, #tpu.memory_space<vmem>>) attributes {dimension_semantics = [#tpu.dimension_semantics<parallel>], iteration_bounds = array<i64: 4>, scalar_prefetch = 0 : i64, scratch_operands = 0 : i64, tpu.core_type = #tpu.core_type<tc>, window_params = [{pipeline_mode = #tpu.pipeline_mode<synchronous>, transform_indices = @transform_0, window_bounds = array<i64: 32, 32>}, {transform_indices = @transform_1, window_bounds = array<i64: 512, 32>}, {transform_indices = @transform_2, window_bounds = array<i64: 512, 32>}, {transform_indices = @transform_3, window_bounds = array<i64: 1, 4, 128>}]} {
    %c0 = arith.constant 0 : index
    %c0_0 = arith.constant 0 : index
    %0 = vector.load %arg1[%c0, %c0_0] : memref<32x32xbf16, #tpu.memory_space<vmem>>, vector<32x32xbf16>
    %1 = tpu.iota {dimensions = array<i32: 0>} : vector<128x128xi32>
    %2 = tpu.iota {dimensions = array<i32: 1>} : vector<128x128xi32>
    %3 = arith.cmpi eq, %1, %2 : vector<128x128xi32>
    %4 = arith.extui %3 : vector<128x128xi1> to vector<128x128xi32>
    %5 = arith.sitofp %4 : vector<128x128xi32> to vector<128x128xf32>
    %cst = arith.constant 1.000000e+00 : f32
    %6 = vector.broadcast %cst : f32 to vector<1x128xf32>
    %c0_1 = arith.constant 0 : index
    %c0_2 = arith.constant 0 : index
    %7 = vector.load %arg2[%c0_1, %c0_2] : memref<512x32xbf16, #tpu.memory_space<vmem>>, vector<128x32xbf16>
    %c0_3 = arith.constant 0 : index
    %c0_4 = arith.constant 0 : index
    %8 = vector.load %arg3[%c0_3, %c0_4] : memref<512x32xbf16, #tpu.memory_space<vmem>>, vector<128x32xbf16>
    %9 = arith.extf %8 : vector<128x32xbf16> to vector<128x32xf32>
    %cst_5 = arith.constant dense<0.000000e+00> : vector<128x32xf32>
    %10 = tpu.matmul %7, %0, %cst_5 {dimension_numbers = #tpu.dot_dimension_numbers<[1], [0], [0], [1], [0, 0, 1, 1], [], []>} : vector<128x32xbf16>, vector<32x32xbf16>, vector<128x32xf32> -> vector<128x32xf32>
    %11 = arith.mulf %10, %9 : vector<128x32xf32>
    %cst_6 = arith.constant dense<0.000000e+00> : vector<128xf32>
    %12 = vector.multi_reduction <add>, %11, %cst_6 [1] : vector<128x32xf32> to vector<128xf32>
    %13 = vector.shape_cast %12 : vector<128xf32> to vector<128x1xf32>
    %14 = vector.broadcast %13 : vector<128x1xf32> to vector<128x128xf32>
    %15 = arith.mulf %14, %5 : vector<128x128xf32>
    %cst_7 = arith.constant dense<0.000000e+00> : vector<1x128xf32>
    %16 = tpu.matmul %6, %15, %cst_7 {dimension_numbers = #tpu.dot_dimension_numbers<[1], [0], [0], [1], [0, 0, 1, 1], [], []>} : vector<1x128xf32>, vector<128x128xf32>, vector<1x128xf32> -> vector<1x128xf32>
    %c0_8 = arith.constant 0 : index
    %c0_9 = arith.constant 0 : index
    %c0_10 = arith.constant 0 : index
    %17 = vector.load %arg4[%c0_8, %c0_9, %c0_10] : memref<1x4x128xf32, #tpu.memory_space<vmem>>, vector<1x1x128xf32>
    %18 = vector.shape_cast %17 : vector<1x1x128xf32> to vector<1x128xf32>
    %19 = vector.shape_cast %16 : vector<1x128xf32> to vector<1x1x128xf32>
    tpu.vector_store %arg4[%c0_8, %c0_9, %c0_10], %19 {strides = array<i32>} : memref<1x4x128xf32, #tpu.memory_space<vmem>>, vector<1x1x128xf32>,
    %c128 = arith.constant 128 : index
    %c0_11 = arith.constant 0 : index
    %20 = vector.load %arg2[%c128, %c0_11] : memref<512x32xbf16, #tpu.memory_space<vmem>>, vector<128x32xbf16>
    %c128_12 = arith.constant 128 : index
    %c0_13 = arith.constant 0 : index
    %21 = vector.load %arg3[%c128_12, %c0_13] : memref<512x32xbf16, #tpu.memory_space<vmem>>, vector<128x32xbf16>
    %22 = arith.extf %21 : vector<128x32xbf16> to vector<128x32xf32>
    %cst_14 = arith.constant dense<0.000000e+00> : vector<128x32xf32>
    %23 = tpu.matmul %20, %0, %cst_14 {dimension_numbers = #tpu.dot_dimension_numbers<[1], [0], [0], [1], [0, 0, 1, 1], [], []>} : vector<128x32xbf16>, vector<32x32xbf16>, vector<128x32xf32> -> vector<128x32xf32>
    %24 = arith.mulf %23, %22 : vector<128x32xf32>
    %cst_15 = arith.constant dense<0.000000e+00> : vector<128xf32>
    %25 = vector.multi_reduction <add>, %24, %cst_15 [1] : vector<128x32xf32> to vector<128xf32>
    %26 = vector.shape_cast %25 : vector<128xf32> to vector<128x1xf32>
    %27 = vector.broadcast %26 : vector<128x1xf32> to vector<128x128xf32>
    %28 = arith.mulf %27, %5 : vector<128x128xf32>
    %cst_16 = arith.constant dense<0.000000e+00> : vector<1x128xf32>
    %29 = tpu.matmul %6, %28, %cst_16 {dimension_numbers = #tpu.dot_dimension_numbers<[1], [0], [0], [1], [0, 0, 1, 1], [], []>} : vector<1x128xf32>, vector<128x128xf32>, vector<1x128xf32> -> vector<1x128xf32>
    %c0_17 = arith.constant 0 : index
    %c1 = arith.constant 1 : index
    %c0_18 = arith.constant 0 : index
    %30 = vector.load %arg4[%c0_17, %c1, %c0_18] : memref<1x4x128xf32, #tpu.memory_space<vmem>>, vector<1x1x128xf32>
    %31 = vector.shape_cast %30 : vector<1x1x128xf32> to vector<1x128xf32>
    %32 = vector.shape_cast %29 : vector<1x128xf32> to vector<1x1x128xf32>
    tpu.vector_store %arg4[%c0_17, %c1, %c0_18], %32 {strides = array<i32>} : memref<1x4x128xf32, #tpu.memory_space<vmem>>, vector<1x1x128xf32>,
    %c256 = arith.constant 256 : index
    %c0_19 = arith.constant 0 : index
    %33 = vector.load %arg2[%c256, %c0_19] : memref<512x32xbf16, #tpu.memory_space<vmem>>, vector<128x32xbf16>
    %c256_20 = arith.constant 256 : index
    %c0_21 = arith.constant 0 : index
    %34 = vector.load %arg3[%c256_20, %c0_21] : memref<512x32xbf16, #tpu.memory_space<vmem>>, vector<128x32xbf16>
    %35 = arith.extf %34 : vector<128x32xbf16> to vector<128x32xf32>
    %cst_22 = arith.constant dense<0.000000e+00> : vector<128x32xf32>
    %36 = tpu.matmul %33, %0, %cst_22 {dimension_numbers = #tpu.dot_dimension_numbers<[1], [0], [0], [1], [0, 0, 1, 1], [], []>} : vector<128x32xbf16>, vector<32x32xbf16>, vector<128x32xf32> -> vector<128x32xf32>
    %37 = arith.mulf %36, %35 : vector<128x32xf32>
    %cst_23 = arith.constant dense<0.000000e+00> : vector<128xf32>
    %38 = vector.multi_reduction <add>, %37, %cst_23 [1] : vector<128x32xf32> to vector<128xf32>
    %39 = vector.shape_cast %38 : vector<128xf32> to vector<128x1xf32>
    %40 = vector.broadcast %39 : vector<128x1xf32> to vector<128x128xf32>
    %41 = arith.mulf %40, %5 : vector<128x128xf32>
    %cst_24 = arith.constant dense<0.000000e+00> : vector<1x128xf32>
    %42 = tpu.matmul %6, %41, %cst_24 {dimension_numbers = #tpu.dot_dimension_numbers<[1], [0], [0], [1], [0, 0, 1, 1], [], []>} : vector<1x128xf32>, vector<128x128xf32>, vector<1x128xf32> -> vector<1x128xf32>
    %c0_25 = arith.constant 0 : index
    %c2 = arith.constant 2 : index
    %c0_26 = arith.constant 0 : index
    %43 = vector.load %arg4[%c0_25, %c2, %c0_26] : memref<1x4x128xf32, #tpu.memory_space<vmem>>, vector<1x1x128xf32>
    %44 = vector.shape_cast %43 : vector<1x1x128xf32> to vector<1x128xf32>
    %45 = vector.shape_cast %42 : vector<1x128xf32> to vector<1x1x128xf32>
    tpu.vector_store %arg4[%c0_25, %c2, %c0_26], %45 {strides = array<i32>} : memref<1x4x128xf32, #tpu.memory_space<vmem>>, vector<1x1x128xf32>,
    %c384 = arith.constant 384 : index
    %c0_27 = arith.constant 0 : index
    %46 = vector.load %arg2[%c384, %c0_27] : memref<512x32xbf16, #tpu.memory_space<vmem>>, vector<128x32xbf16>
    %c384_28 = arith.constant 384 : index
    %c0_29 = arith.constant 0 : index
    %47 = vector.load %arg3[%c384_28, %c0_29] : memref<512x32xbf16, #tpu.memory_space<vmem>>, vector<128x32xbf16>
    %48 = arith.extf %47 : vector<128x32xbf16> to vector<128x32xf32>
    %cst_30 = arith.constant dense<0.000000e+00> : vector<128x32xf32>
    %49 = tpu.matmul %46, %0, %cst_30 {dimension_numbers = #tpu.dot_dimension_numbers<[1], [0], [0], [1], [0, 0, 1, 1], [], []>} : vector<128x32xbf16>, vector<32x32xbf16>, vector<128x32xf32> -> vector<128x32xf32>
    %50 = arith.mulf %49, %48 : vector<128x32xf32>
    %cst_31 = arith.constant dense<0.000000e+00> : vector<128xf32>
    %51 = vector.multi_reduction <add>, %50, %cst_31 [1] : vector<128x32xf32> to vector<128xf32>
    %52 = vector.shape_cast %51 : vector<128xf32> to vector<128x1xf32>
    %53 = vector.broadcast %52 : vector<128x1xf32> to vector<128x128xf32>
    %54 = arith.mulf %53, %5 : vector<128x128xf32>
    %cst_32 = arith.constant dense<0.000000e+00> : vector<1x128xf32>
    %55 = tpu.matmul %6, %54, %cst_32 {dimension_numbers = #tpu.dot_dimension_numbers<[1], [0], [0], [1], [0, 0, 1, 1], [], []>} : vector<1x128xf32>, vector<128x128xf32>, vector<1x128xf32> -> vector<1x128xf32>
    %c0_33 = arith.constant 0 : index
    %c3 = arith.constant 3 : index
    %c0_34 = arith.constant 0 : index
    %56 = vector.load %arg4[%c0_33, %c3, %c0_34] : memref<1x4x128xf32, #tpu.memory_space<vmem>>, vector<1x1x128xf32>
    %57 = vector.shape_cast %56 : vector<1x1x128xf32> to vector<1x128xf32>
    %58 = vector.shape_cast %55 : vector<1x128xf32> to vector<1x1x128xf32>
    tpu.vector_store %arg4[%c0_33, %c3, %c0_34], %58 {strides = array<i32>} : memref<1x4x128xf32, #tpu.memory_space<vmem>>, vector<1x1x128xf32>,
    return
  }
  func.func @transform_0(%arg0: i32) -> (i32, i32) {
    %c0_i32 = arith.constant 0 : i32
    %c0_i32_0 = arith.constant 0 : i32
    %c0_i32_1 = arith.constant 0 : i32
    return %c0_i32, %c0_i32_0 : i32, i32
  }
  func.func @transform_1(%arg0: i32) -> (i32, i32) {
    %c0_i32 = arith.constant 0 : i32
    %c0_i32_0 = arith.constant 0 : i32
    return %arg0, %c0_i32 : i32, i32
  }
  func.func @transform_2(%arg0: i32) -> (i32, i32) {
    %c0_i32 = arith.constant 0 : i32
    %c0_i32_0 = arith.constant 0 : i32
    return %arg0, %c0_i32 : i32, i32
  }
  func.func @transform_3(%arg0: i32) -> (i32, i32, i32) {
    %c0_i32 = arith.constant 0 : i32
    %c0_i32_0 = arith.constant 0 : i32
    %c0_i32_1 = arith.constant 0 : i32
    return %arg0, %c0_i32, %c0_i32_0 : i32, i32, i32
  }
}

</mosaic_0001>

<bundles_post_ra>
// kernel: tpu_custom_call.1
= control target key start
LH: loop header
LB: loop body
LE: loop exit
PB: predicated region body
PF: predicated region fallthrough
CT: control target
= control target key end

     0   :  { %8 = vsyncpa [#allocation3], 0  ;;  %s2484_s0 = inlined_call_operand.vmem [shape: bf16[32,32], index: 0, kind: input, shape index: {}]   ;;  %s2485_s1 = inlined_call_operand.vmem [shape: bf16[2000,32], index: 1, kind: input, shape index: {}]   ;;  %s2486_s2 = inlined_call_operand.vmem [shape: bf16[2000,32], index: 2, kind: input, shape index: {}]   ;;  %s2487_s3 = inlined_call_operand.hbm [shape: f32[4,4,128], index: 3, kind: output, shape index: {}]  }
   0x1   :  { %10 = vsyncpa [#allocation3 + $0x1], 0  ;;  %s1970_s12 = smov 0   ;;  %s1972_s13 = smov 0  }
   0x2   :  { %s1974_s14 = smov 0   ;;  %s1976_s15 = smov 0  }
   0x3 LB: > { %s1991_s16 = sadd.s32 4294967295, %s1946_s15   ;;  %s1453_s17 = sadd.s32 4294967294, %s1946_s15   ;;  %s1946_s15 = sphi %s1976_s15, %s2493_s15   ;;  %s1942_s14 = sphi %s1974_s14, %s2492_s14   ;;  %s1938_s13 = sphi %s1972_s13, %s2491_s13   ;;  %s1934_s12 = sphi %s1970_s12, %s2490_s12  }
   0x4   : > { %s1995_s18 = sadd.s32 1, %s1946_s15   ;;  %s96_s19 = sadd.s32 1, %s1942_s14 }
   0x5   : > { %s93_s20 = ssub.s32 %s1946_s15, %s1995_s18  ;;  %p106_p0 = scmp.ne.s32.totalorder %s1942_s14, %s1938_s13 }
   0x6   : > { %p94_p1 = scmp.eq.s32.totalorder %s93_s20, 0  ;;  %p107_p2 = scmp.eq.s32.totalorder %s1991_s16, 3 }
   0x7   : > { %p112_p3 = scmp.ne.s32.totalorder %s1938_s13, %s1934_s12  ;;  %p113_p4 = scmp.eq.s32.totalorder %s1453_s17, 3 }
   0x8   : > { %s2006_s21 = scalar_select %p94_p1, %s1942_s14, %s96_s19  }
   0x9   : > { %p2008_p5 = por %p107_p2, %p106_p0  ;;  %p2012_p6 = por %p113_p4, %p112_p3 }
   0xa   : > { %p1456_p7 = scmp.ge.s32.totalorder %s1946_s15, 1  ;;  %p168_p8 = scmp.lt.s32.totalorder %s1946_s15, 5 }
   0xc   : > { %p169_p9 = pnand %p1456_p7, %p168_p8 }
   0xd   : > { %s1458_s26 = sshll.u32 (!%p169_p9), %s1991_s16, 6  ;;  %s202_s9 = sand.u32 (!%p169_p9), 1, %s1938_s13  }
   0xe   : > { %172 = sbr.rel (%p169_p9) target bundleno = 1381 (0x565), region = 32  ;;  %p210_p10 = scmp.lt.s32.totalorder (!%p169_p9), %s1458_s26, 249 }
   0xf   : > { %s1457_s10 = sshll.u32 (!%p169_p9), %s202_s9, 2  ;;  %s1647_s17 = sshll.u32 (!%p169_p9), %s1991_s16, 2 }
  0x10   : > { %s2227_s11 = scalar_lea.vmem (!%p169_p9), [#allocation2], %s1457_s10  ;;  %s1377_s24 = scalar_lea.hbm (!%p169_p9), %s2487_s3, %s1647_s17 }
  0x11   : > { %s1379_s25 = sshll.u32 (!%p169_p9), %s2227_s11, 4  ;;  %s1367_s27 = scalar_lea.sflag (!%p169_p9), [#allocation3], %s202_s9  ;;  %s1380_s25 = int_to_ptr.vmem [resolvable:$true] %s1379_s25 }
  0x12   : > { %s1904_s4 = scalar_lea.hbm (!%p169_p9), %s2487_s3, 16 }
  0x13   : > { %v2021_v0 = vld [vmem:[%s2484_s0 + $0x8] sm:$0xff]  ;;  %v2028_v1 = vld [vmem:[%s2484_s0] sm:$0xff]  ;;  %s2495_s26 = smov (!%p210_p10, %s1458_s26), 249  ;;  %vm405_vm0 = vcmask 261120  }
  0x14   : > { %436 = vmatpush.bf16.msra.mxu0 %v2021_v0  ;;  %698 = vmatpush.bf16.msra.mxu2 %v2021_v0  ;;  %s1459_s29 = sshll.u32 %s2495_s26, 2  ;;  %s1381_s26 = sshll.u32 %s1377_s24, 4  ;;  %s1382_s26 = int_to_ptr.hbm [resolvable:$true] %s1381_s26 }
  0x15   : > { %s2040_s5 = scalar_lea.vmem %s2485_s1, %s1459_s29  ;;  %s2074_s8 = scalar_lea.vmem %s2486_s2, %s1459_s29 }
  0x16   : > { %v1652_v2 = vld [vmem:[%s2040_s5] sm:$0xff]  ;;  %v1653_v3 = vld [vmem:[%s2040_s5 + $0x8] sm:$0xff]  ;;  %v1654_v4 = vld [vmem:[%s2040_s5 + $0x10] sm:$0xff]  ;;  %s1898_s28 = sshra.s32 %s1382_s26, 4  ;;  %s1899_s28 = int_to_ptr.hbm [resolvable:$true] %s1898_s28 }
  0x17   : > { %v1655_v5 = vld [vmem:[%s2040_s5 + $0x18] sm:$0xff]  ;;  %v1656_v6 = vld [vmem:[%s2040_s5 + $0x20] sm:$0xff]  ;;  %v1657_v7 = vld [vmem:[%s2040_s5 + $0x28] sm:$0xff]  ;;  %s1900_s29 = scalar_lea.hbm %s1899_s28, 4  ;;  %p1905_p0 = scmp.lt.s32.totalorder %s1899_s28, %s2487_s3 }
  0x18   : > { %437 = vmatpush.bf16.msra.mxu0 %v2028_v1  ;;  %699 = vmatpush.bf16.msra.mxu2 %v2028_v1  ;;  %v1658_v8 = vld [vmem:[%s2040_s5 + $0x30] sm:$0xff]  ;;  %v1659_v9 = vld [vmem:[%s2040_s5 + $0x38] sm:$0xff]  ;;  %v1816_v20 = vld [vmem:[%s2074_s8 + $0x28] sm:$0xff]   ;;  %p1901_p11 = scmp.ne.s32.totalorder %s1899_s28, %s1900_s29  ;;  %p1906_p1 = scmp.lt.s32.totalorder %s1904_s4, %s1900_s29 }
  0x19   : > { %v1706_v21 = vunpack.c.l.bf16 %v1816_v20  ;;  %v1707_v25 = vunpack.c.h.bf16 %v1816_v20  ;;  %v1814_v28 = vld [vmem:[%s2074_s8 + $0x18] sm:$0xff]   ;;  %v1817_v29 = vld [vmem:[%s2074_s8 + $0x30] sm:$0xff]   ;;  %v1815_v42 = vld [vmem:[%s2074_s8 + $0x20] sm:$0xff]  }
  0x1a   : > { %v1699_v30 = vunpack.c.h.bf16 %v1814_v28  ;;  %v1710_v32 = vunpack.c.l.bf16 %v1817_v29  ;;  %v1813_v34 = vld [vmem:[%s2074_s8 + $0x10] sm:$0xff]   ;;  %v1711_v40 = vunpack.c.h.bf16 %v1817_v29  ;;  %v1685_v45 = vld [vmem:[%s2074_s8] sm:$0xff]   ;;  %v1818_v46 = vld [vmem:[%s2074_s8 + $0x38] sm:$0xff]   ;;  %v1702_v48 = vunpack.c.l.bf16 %v1815_v42  ;;  %p1902_p12 = pnand %p1901_p11, %p2008_p5  ;;  %p1907_p2 = por %p1906_p1, %p1905_p0 }
  0x1b   : > { %1518 = vmatmul.msk.bf16.vlgmr.msra.gmra.mxu0 %vm405_vm0, %v1652_v2  ;;  %v1694_v37 = vunpack.c.l.bf16 %v1813_v34  ;;  %v1687_v47 = vunpack.c.h.bf16 %v1685_v45  ;;  %v1714_v51 = vunpack.c.l.bf16 %v1818_v46  ;;  %v1695_v56 = vunpack.c.h.bf16 %v1813_v34  ;;  %v1812_v62 = vld [vmem:[%s2074_s8 + $0x8] sm:$0xff]  }
  0x1c   : > { %v1715_v60 = vunpack.c.h.bf16 %v1818_v46  ;;  %p1903_p13 = pneg %p1902_p12 }
  0x1e   : > { %p1908_p3 = pnand %p1907_p2, %p1903_p13 }
  0x2b   : > { %1519 = vmatmul.msk.bf16.gmra.mxu0 %vm405_vm0, %v1653_v3  ;;  %v1690_v3 = vunpack.c.l.bf16 %v1812_v62 }
  0x3b   : > { %1520 = vmatmul.msk.bf16.gmra.mxu0 %vm405_vm0, %v1654_v4 }
  0x4b   : > { %1521 = vmatmul.msk.bf16.gmra.mxu0 %vm405_vm0, %v1655_v5 }
  0x5b   : > { %1522 = vmatmul.msk.bf16.gmra.mxu0 %vm405_vm0, %v1656_v6  ;;  %v1703_v6 = vunpack.c.h.bf16 %v1815_v42 }
  0x6b   : > { %1523 = vmatmul.msk.bf16.gmra.mxu0 %vm405_vm0, %v1657_v7 }
  0x7b   : > { %1524 = vmatmul.msk.bf16.gmra.mxu0 %vm405_vm0, %v1658_v8 }
  0x8b   : > { %1525 = vmatmul.msk.bf16.gmra.mxu0 %vm405_vm0, %v1659_v9 }
  0x98   : > { %v2059_v10 = vpop.f32.mrf.mxu0 }
  0xa0   : > { %v441_v11 = vpop.f32.mrf.mxu0 }
  0xa1   : > { %v480_v52 = vmul.f32 %v1687_v47, %v441_v11  ;;  %v1698_v11 = vunpack.c.l.bf16 %v1814_v28 }
  0xa3   : > { %v498_v57 = vsel %vm405_vm0, %v480_v52, 0.0 }
  0xa8   : > { %v2061_v12 = vpop.f32.mrf.mxu0 }
  0xa9   : > { %v481_v7 = vmul.f32 %v1690_v3, %v2061_v12 }
  0xab   : > { %v501_v9 = vsel %vm405_vm0, %v481_v7, 0.0 }
  0xb0   : > { %v2063_v13 = vpop.f32.mrf.mxu0 }
  0xb8   : > { %v449_v14 = vpop.f32.mrf.mxu0 }
  0xb9   : > { %v483_v41 = vmul.f32 %v1694_v37, %v449_v14 }
  0xbb   : > { %v507_v49 = vsel %vm405_vm0, %v483_v41, 0.0 }
  0xc0   : > { %v451_v15 = vpop.f32.mrf.mxu0 }
  0xc1   : > { %v484_v61 = vmul.f32 %v1695_v56, %v451_v15 }
  0xc3   : > { %v510_v4 = vsel %vm405_vm0, %v484_v61, 0.0 }
  0xc8   : > { %v2065_v16 = vpop.f32.mrf.mxu0 }
  0xc9   : > { %v485_v15 = vmul.f32 %v1698_v11, %v2065_v16 }
  0xd0   : > { %v456_v17 = vpop.f32.mrf.mxu0 }
  0xd1   : > { %v486_v33 = vmul.f32 %v1699_v30, %v456_v17  ;;  %v1691_v17 = vunpack.c.h.bf16 %v1812_v62 }
  0xd3   : > { %v516_v38 = vsel %vm405_vm0, %v486_v33, 0.0  ;;  %v482_v20 = vmul.f32 %v1691_v17, %v2063_v13 }
  0xd5   : > { %v504_v12 = vsel %vm405_vm0, %v482_v20, 0.0 }
  0xd8   : > { %v459_v18 = vpop.f32.mrf.mxu0 }
  0xd9   : > { %v487_v53 = vmul.f32 %v1702_v48, %v459_v18  ;;  %v513_v18 = vsel %vm405_vm0, %v485_v15, 0.0 }
  0xdb   : > { %v519_v58 = vsel %vm405_vm0, %v487_v53, 0.0 }
  0xe0   : > { %v2067_v19 = vpop.f32.mrf.mxu0 }
  0xe1   : > { %v488_v8 = vmul.f32 %v1703_v6, %v2067_v19 }
  0xe3   : > { %v522_v14 = vsel %vm405_vm0, %v488_v8, 0.0 }
  0xe8   : > { %v464_v22 = vpop.f32.mrf.mxu0 }
  0xe9   : > { %v489_v23 = vmul.f32 %v1706_v21, %v464_v22  ;;  %v1686_v21 = vunpack.c.l.bf16 %v1685_v45 }
  0xeb   : > { %v525_v24 = vsel %vm405_vm0, %v489_v23, 0.0  ;;  %v479_v19 = vmul.f32 %v1686_v21, %v2059_v10 }
  0xec   : > { %526 = vadd.xlane.f32.xlu2 %v525_v24  ;;  %v238_v24 = vlaneseq }
  0xed   : > { %v495_v22 = vsel %vm405_vm0, %v479_v19, 0.0 }
  0xee   : > { %v2108_v28 = vand.u32 127, %v238_v24 }
  0xf0   : > { %v466_v26 = vpop.f32.mrf.mxu0 }
  0xf1   : > { %v490_v27 = vmul.f32 %v1707_v25, %v466_v26  ;;  %v2105_v26 = vshrl.u32 %v238_v24, 7 }
  0xf3   : > { %v528_v31 = vsel %vm405_vm0, %v490_v27, 0.0  ;;  %v254_v16 = vadd.s32 120, %v2105_v26  ;;  %v253_v13 = vadd.s32 112, %v2105_v26  ;;  %v252_v30 = vadd.s32 104, %v2105_v26 }
  0xf4   : > { %529 = vadd.xlane.f32.xlu2 %v528_v31  ;;  %v251_v31 = vadd.s32 96, %v2105_v26  ;;  %v250_v34 = vadd.s32 88, %v2105_v26  ;;  %v249_v37 = vadd.s32 80, %v2105_v26  ;;  %v248_v41 = vadd.s32 72, %v2105_v26 }
  0xf5   : > { %vm272_vm1 = vcmp.eq.s32.totalorder %v254_v16, %v2108_v28  ;;  %vm271_vm2 = vcmp.eq.s32.totalorder %v253_v13, %v2108_v28  ;;  %vm270_vm3 = vcmp.eq.s32.totalorder %v252_v30, %v2108_v28  ;;  %v247_v45 = vadd.s32 64, %v2105_v26  ;;  %v1671_v30 = vld [vmem:[%s2040_s5 + $0x98] sm:$0xff] }
  0xf6   : > { %vm269_vm4 = vcmp.eq.s32.totalorder %v251_v31, %v2108_v28  ;;  %vm268_vm5 = vcmp.eq.s32.totalorder %v250_v34, %v2108_v28  ;;  %vm267_vm6 = vcmp.eq.s32.totalorder %v249_v37, %v2108_v28  ;;  %v246_v48 = vadd.s32 56, %v2105_v26  ;;  %v1673_v31 = vld [vmem:[%s2040_s5 + $0xa8] sm:$0xff]  ;;  %v1675_v34 = vld [vmem:[%s2040_s5 + $0xb8] sm:$0xff] }
  0xf7   : > { %vm266_vm7 = vcmp.eq.s32.totalorder %v248_v41, %v2108_v28  ;;  %vm265_vm8 = vcmp.eq.s32.totalorder %v247_v45, %v2108_v28  ;;  %v245_v53 = vadd.s32 48, %v2105_v26  ;;  %v244_v56 = vadd.s32 40, %v2105_v26 }
  0xf8   : > { %v469_v35 = vpop.f32.mrf.mxu0  ;;  %vm264_vm9 = vcmp.eq.s32.totalorder %v246_v48, %v2108_v28  ;;  %v241_v6 = vadd.s32 16, %v2105_v26  ;;  %v240_v8 = vadd.s32 8, %v2105_v26  ;;  %v1949_v13 = vmov 1.0  }
  0xf9   : > { %v491_v36 = vmul.f32 %v1710_v32, %v469_v35  ;;  %v1948_v32 = vmov 0.0   ;;  %vm263_vm10 = vcmp.eq.s32.totalorder %v245_v53, %v2108_v28  ;;  %vm262_vm11 = vcmp.eq.s32.totalorder %v244_v56, %v2108_v28 }
  0xfa   : > { %v2116_v33 = vsel %vm272_vm1, 1.0, %v1948_v32  ;;  %v2121_v35 = vsel %vm271_vm2, 1.0, %v1948_v32  ;;  %v2133_v42 = vsel %vm269_vm4, 1.0, %v1948_v32  ;;  %v2139_v46 = vsel %vm268_vm5, 1.0, %v1948_v32 }
  0xfb   : > { %v531_v39 = vsel %vm405_vm0, %v491_v36, 0.0  ;;  %v2169_v3 = vsel %vm263_vm10, 1.0, %v1948_v32  ;;  %v2175_v7 = vsel %vm262_vm11, 1.0, %v1948_v32  ;;  %vm259_vm14 = vcmp.eq.s32.totalorder %v241_v6, %v2108_v28 }
  0xfc   : > { %517 = vadd.xlane.f32.xlu2 %v516_v38  ;;  %532 = vadd.xlane.f32.xlu1 %v531_v39  ;;  %v2127_v39 = vsel %vm270_vm3, 1.0, %v1948_v32  ;;  %vm258_vm15 = vcmp.eq.s32.totalorder %v240_v8, %v2108_v28  ;;  %vm257_vm1 = vcmp.eq.s32.totalorder %v2105_v26, %v2108_v28 }
  0xfd   : > { %v2195_v19 = vsel %vm258_vm15, 1.0, %v1948_v32 }
 0x100   : > { %v471_v43 = vpop.f32.mrf.mxu0 }
 0x101   : > { %v492_v44 = vmul.f32 %v1711_v40, %v471_v43 }
 0x103   : > { %v534_v50 = vsel %vm405_vm0, %v492_v44, 0.0 }
 0x104   : > { %508 = vadd.xlane.f32.xlu2 %v507_v49  ;;  %535 = vadd.xlane.f32.xlu1 %v534_v50  ;;  %v2145_v50 = vsel %vm267_vm6, 1.0, %v1948_v32 }
 0x108   : > { %v474_v54 = vpop.f32.mrf.mxu0 }
 0x109   : > { %v493_v55 = vmul.f32 %v1714_v51, %v474_v54  ;;  %v2151_v54 = vsel %vm266_vm7, 1.0, %v1948_v32 }
 0x10b   : > { %v537_v59 = vsel %vm405_vm0, %v493_v55, 0.0 }
 0x10c   : > { %499 = vadd.xlane.f32.xlu2 %v498_v57  ;;  %520 = vadd.xlane.f32.xlu1 %v519_v58  ;;  %v2157_v57 = vsel %vm265_vm8, 1.0, %v1948_v32  ;;  %v243_v58 = vadd.s32 32, %v2105_v26 }
 0x10d   : > { %538 = vadd.xlane.f32.xlu0 %v537_v59 }
 0x10e   : > { %vm261_vm12 = vcmp.eq.s32.totalorder %v243_v58, %v2108_v28  ;;  %v1660_v58 = vld [vmem:[%s2040_s5 + $0x40] sm:$0xff] }
 0x10f   : > { %v2181_v11 = vsel %vm261_vm12, 1.0, %v1948_v32  ;;  %1558 = vmatmul.msk.bf16.vlgmr.msra.gmra.mxu2 %vm405_vm0, %v1660_v58 }
 0x110   : > { %v476_v63 = vpop.f32.mrf.mxu0 }
 0x111   : > { %v494_v2 = vmul.f32 %v1715_v60, %v476_v63  ;;  %v2163_v60 = vsel %vm264_vm9, 1.0, %v1948_v32  ;;  %v242_v63 = vadd.s32 24, %v2105_v26  ;;  %v1668_v26 = vld [vmem:[%s2040_s5 + $0x80] sm:$0xff] }
 0x113   : > { %v540_v5 = vsel %vm405_vm0, %v494_v2, 0.0  ;;  %vm260_vm13 = vcmp.eq.s32.totalorder %v242_v63, %v2108_v28  ;;  %v1669_v28 = vld [vmem:[%s2040_s5 + $0x88] sm:$0xff]  ;;  %v1833_v63 = vld [vmem:[%s2074_s8 + $0xb0] sm:$0xff]  }
 0x114   : > { %511 = vadd.xlane.f32.xlu1 %v510_v4  ;;  %v2186_v15 = vsel %vm260_vm13, 1.0, %v1948_v32 }
 0x115   : > { %541 = vadd.xlane.f32.xlu0 %v540_v5 }
 0x11c   : > { %502 = vadd.xlane.f32.xlu1 %v501_v9 }
 0x11d   : > { %523 = vadd.xlane.f32.xlu0 %v522_v14 }
 0x125   : > { %514 = vadd.xlane.f32.xlu0 %v513_v18  ;;  %v2191_v18 = vsel %vm259_vm14, 1.0, %v1948_v32 }
 0x12d   : > { %505 = vadd.xlane.f32.xlu0 %v504_v12 }
 0x135   : > { %496 = vadd.xlane.f32.xlu0 %v495_v22 }
 0x15f   : > { %v527_v25 = vpop.xlane.xlu2 %526 }
 0x160   : > { %v553_v55 = vmul.f32 %v2145_v50, %v527_v25  ;;  %v2202_v25 = vsel %vm257_vm1, 1.0, %v1948_v32  ;;  %v1674_v32 = vld [vmem:[%s2040_s5 + $0xb0] sm:$0xff] }
 0x167   : > { %v530_v10 = vpop.xlane.xlu2 %529 }
 0x168   : > { %v554_v52 = vmul.f32 %v2139_v46, %v530_v10  ;;  %v1672_v10 = vld [vmem:[%s2040_s5 + $0xa0] sm:$0xff] }
 0x16f   : > { %v533_v23 = vpop.xlane.xlu1 %532  ;;  %v518_v47 = vpop.xlane.xlu2 %517 }
 0x170   : > { %v555_v49 = vmul.f32 %v2133_v42, %v533_v23  ;;  %v550_v5 = vmul.f32 %v2163_v60, %v518_v47 }
 0x177   : > { %v536_v29 = vpop.xlane.xlu1 %535  ;;  %v509_v2 = vpop.xlane.xlu2 %508 }
 0x178   : > { %v556_v44 = vmul.f32 %v2127_v39, %v536_v29  ;;  %v547_v17 = vmul.f32 %v2181_v11, %v509_v2  ;;  %v1670_v29 = vld [vmem:[%s2040_s5 + $0x90] sm:$0xff] }
 0x17f   : > { %v521_v43 = vpop.xlane.xlu1 %520  ;;  %v500_v22 = vpop.xlane.xlu2 %499 }
 0x180   : > { %v539_v27 = vpop.xlane.xlu0 %538  ;;  %v551_v62 = vmul.f32 %v2157_v57, %v521_v43  ;;  %v544_v24 = vmul.f32 %v2195_v19, %v500_v22 }
 0x181   : > { %v557_v40 = vmul.f32 %v2121_v35, %v539_v27 }
 0x187   : > { %v512_v61 = vpop.xlane.xlu1 %511 }
 0x188   : > { %v542_v36 = vpop.xlane.xlu0 %541  ;;  %v548_v14 = vmul.f32 %v2175_v7, %v512_v61 }
 0x189   : > { %v558_v38 = vmul.f32 %v2116_v33, %v542_v36 }
 0x18b   : > { %559 = vmatpush.msra.mxu1 %v558_v38 }
 0x18d   : > { %560 = vmatpush.msra.mxu1 %v557_v40 }
 0x18f   : > { %561 = vmatpush.msra.mxu1 %v556_v44  ;;  %v503_v20 = vpop.xlane.xlu1 %502 }
 0x190   : > { %v524_v51 = vpop.xlane.xlu0 %523  ;;  %v545_v23 = vmul.f32 %v2191_v18, %v503_v20 }
 0x191   : > { %562 = vmatpush.msra.mxu1 %v555_v49  ;;  %v552_v59 = vmul.f32 %v2151_v54, %v524_v51  ;;  %v1832_v51 = vld [vmem:[%s2074_s8 + $0xa8] sm:$0xff]  }
 0x193   : > { %563 = vmatpush.msra.mxu1 %v554_v52  ;;  %v1770_v52 = vunpack.c.l.bf16 %v1832_v51 }
 0x195   : > { %564 = vmatpush.msra.mxu1 %v553_v55 }
 0x197   : > { %565 = vmatpush.msra.mxu1 %v552_v59  ;;  %v1771_v59 = vunpack.c.h.bf16 %v1832_v51 }
 0x198   : > { %v515_v4 = vpop.xlane.xlu0 %514 }
 0x199   : > { %566 = vmatpush.msra.mxu1 %v551_v62  ;;  %v549_v9 = vmul.f32 %v2169_v3, %v515_v4  ;;  %v1774_v4 = vunpack.c.l.bf16 %v1833_v63 }
 0x19b   : > { %567 = vmatpush.msra.mxu1 %v550_v5 }
 0x19d   : > { %568 = vmatpush.msra.mxu1 %v549_v9  ;;  %v1661_v9 = vld [vmem:[%s2040_s5 + $0x48] sm:$0xff] }
 0x19e   : > { %1559 = vmatmul.msk.bf16.gmra.mxu2 %vm405_vm0, %v1661_v9 }
 0x19f   : > { %569 = vmatpush.msra.mxu1 %v548_v14  ;;  %v1775_v14 = vunpack.c.h.bf16 %v1833_v63 }
 0x1a0   : > { %v506_v21 = vpop.xlane.xlu0 %505 }
 0x1a1   : > { %v546_v12 = vmul.f32 %v2186_v15, %v506_v21  ;;  %570 = vmatpush.msra.mxu1 %v547_v17  ;;  %v1830_v21 = vld [vmem:[%s2074_s8 + $0x98] sm:$0xff]  }
 0x1a2   : > { %v1763_v22 = vunpack.c.h.bf16 %v1830_v21 }
 0x1a3   : > { %571 = vmatpush.msra.mxu1 %v546_v12  ;;  %v1834_v12 = vld [vmem:[%s2074_s8 + $0xb8] sm:$0xff]  }
 0x1a5   : > { %572 = vmatpush.msra.mxu1 %v545_v23 }
 0x1a7   : > { %573 = vmatpush.msra.mxu1 %v544_v24  ;;  %v1778_v24 = vunpack.c.l.bf16 %v1834_v12 }
 0x1a8   : > { %v497_v16 = vpop.xlane.xlu0 %496 }
 0x1a9   : > { %v543_v27 = vmul.f32 %v2202_v25, %v497_v16 }
 0x1ab   : > { %574 = vmatpush.msra.mxu1 %v543_v27  ;;  %v1829_v27 = vld [vmem:[%s2074_s8 + $0x90] sm:$0xff]  }
 0x1ac   : > { %575 = vmatmul.f32.vlgmr.msra.gmra.mxu1 %v1949_v13  ;;  %v1759_v58 = vunpack.c.h.bf16 %v1829_v27 }
 0x1ad   : > { %960 = vmatpush.bf16.msrb.mxu1 %v2021_v0 }
 0x1b1   : > { %961 = vmatpush.bf16.msrb.mxu1 %v2028_v1 }
 0x1b4   : > { %1598 = vmatmul.msk.bf16.vlgmr.msrb.gmra.mxu1 %vm405_vm0, %v1668_v26  ;;  %v1831_v26 = vld [vmem:[%s2074_s8 + $0xa0] sm:$0xff]  }
 0x1b5   : > { %v1767_v63 = vunpack.c.h.bf16 %v1831_v26 }
 0x1c4   : > { %1599 = vmatmul.msk.bf16.gmra.mxu1 %vm405_vm0, %v1669_v28 }
 0x1d4   : > { %1600 = vmatmul.msk.bf16.gmra.mxu1 %vm405_vm0, %v1670_v29 }
 0x1e4   : > { %1601 = vmatmul.msk.bf16.gmra.mxu1 %vm405_vm0, %v1671_v30  ;;  %v1758_v30 = vunpack.c.l.bf16 %v1829_v27  ;;  %v1666_v27 = vld [vmem:[%s2040_s5 + $0x70] sm:$0xff] }
 0x1f4   : > { %1602 = vmatmul.msk.bf16.gmra.mxu1 %vm405_vm0, %v1672_v10  ;;  %v1766_v10 = vunpack.c.l.bf16 %v1831_v26  ;;  %v1667_v26 = vld [vmem:[%s2040_s5 + $0x78] sm:$0xff] }
 0x204   : > { %1603 = vmatmul.msk.bf16.gmra.mxu1 %vm405_vm0, %v1673_v31 }
 0x214   : > { %1604 = vmatmul.msk.bf16.gmra.mxu1 %vm405_vm0, %v1674_v32 }
 0x224   : > { %1605 = vmatmul.msk.bf16.gmra.mxu1 %vm405_vm0, %v1675_v34  ;;  %v1662_v34 = vld [vmem:[%s2040_s5 + $0x50] sm:$0xff] }
 0x225   : > { %1560 = vmatmul.msk.bf16.gmra.mxu2 %vm405_vm0, %v1662_v34 }
 0x229   : > { %v576_v36 = vpop.f32.mrf.mxu1 }
 0x22a   : > { %579 = vst [vmem:[%s2227_s11] sm:$0x1] %v576_v36  ;;  %v1779_v36 = vunpack.c.h.bf16 %v1834_v12 }
 0x231   : > { %v2230_v37 = vpop.f32.mrf.mxu1 }
 0x239   : > { %v2232_v38 = vpop.f32.mrf.mxu1 }
 0x241   : > { %v2234_v40 = vpop.f32.mrf.mxu1 }
 0x249   : > { %v2236_v41 = vpop.f32.mrf.mxu1 }
 0x251   : > { %v973_v43 = vpop.f32.mrf.mxu1 }
 0x252   : > { %v1007_v51 = vmul.f32 %v1758_v30, %v973_v43 }
 0x259   : > { %v2238_v44 = vpop.f32.mrf.mxu1 }
 0x261   : > { %v2240_v45 = vpop.f32.mrf.mxu1 }
 0x269   : > { %v980_v47 = vpop.f32.mrf.mxu1 }
 0x26a   : > { %v1010_v16 = vmul.f32 %v1763_v22, %v980_v47  ;;  %v1664_v22 = vld [vmem:[%s2040_s5 + $0x60] sm:$0xff] }
 0x26c   : > { %v1040_v31 = vsel %vm405_vm0, %v1010_v16, 0.0  ;;  %v1665_v16 = vld [vmem:[%s2040_s5 + $0x68] sm:$0xff] }
 0x271   : > { %v983_v48 = vpop.f32.mrf.mxu1 }
 0x272   : > { %v1011_v47 = vmul.f32 %v1766_v10, %v983_v48  ;;  %v1008_v48 = vmul.f32 %v1759_v58, %v2238_v44 }
 0x274   : > { %v1034_v9 = vsel %vm405_vm0, %v1008_v48, 0.0 }
 0x279   : > { %v985_v49 = vpop.f32.mrf.mxu1 }
 0x281   : > { %v988_v53 = vpop.f32.mrf.mxu1 }
 0x282   : > { %v1013_v55 = vmul.f32 %v1770_v52, %v988_v53  ;;  %v1827_v53 = vld [vmem:[%s2074_s8 + $0x80] sm:$0xff]  }
 0x284   : > { %v1049_v56 = vsel %vm405_vm0, %v1013_v55, 0.0 }
 0x285   : > { %1050 = vadd.xlane.f32.xlu0 %v1049_v56  ;;  %v1751_v56 = vunpack.c.h.bf16 %v1827_v53 }
 0x287   : > { %v1004_v43 = vmul.f32 %v1751_v56, %v2232_v38 }
 0x289   : > { %v990_v61 = vpop.f32.mrf.mxu1 }
 0x28a   : > { %v1014_v62 = vmul.f32 %v1771_v59, %v990_v61  ;;  %v1031_v59 = vsel %vm405_vm0, %v1007_v51, 0.0  ;;  %v1043_v61 = vsel %vm405_vm0, %v1011_v47, 0.0 }
 0x28c   : > { %v1052_v2 = vsel %vm405_vm0, %v1014_v62, 0.0 }
 0x28d   : > { %1053 = vadd.xlane.f32.xlu2 %v1052_v2  ;;  %v1828_v2 = vld [vmem:[%s2074_s8 + $0x88] sm:$0xff]  }
 0x291   : > { %v993_v5 = vpop.f32.mrf.mxu1 }
 0x292   : > { %v1015_v6 = vmul.f32 %v1774_v4, %v993_v5  ;;  %v1012_v4 = vmul.f32 %v1767_v63, %v985_v49  ;;  %v1663_v5 = vld [vmem:[%s2040_s5 + $0x58] sm:$0xff] }
 0x293   : > { %1561 = vmatmul.msk.bf16.gmra.mxu2 %vm405_vm0, %v1663_v5 }
 0x294   : > { %v1055_v8 = vsel %vm405_vm0, %v1015_v6, 0.0  ;;  %v1754_v6 = vunpack.c.l.bf16 %v1828_v2 }
 0x295   : > { %1056 = vadd.xlane.f32.xlu1 %v1055_v8  ;;  %v1022_v8 = vsel %vm405_vm0, %v1004_v43, 0.0 }
 0x296   : > { %v1005_v38 = vmul.f32 %v1754_v6, %v2234_v40 }
 0x298   : > { %v1025_v49 = vsel %vm405_vm0, %v1005_v38, 0.0 }
 0x299   : > { %v995_v17 = vpop.f32.mrf.mxu1 }
 0x29a   : > { %v1016_v20 = vmul.f32 %v1775_v14, %v995_v17  ;;  %v1762_v14 = vunpack.c.l.bf16 %v1830_v21  ;;  %v1046_v17 = vsel %vm405_vm0, %v1012_v4, 0.0 }
 0x29c   : > { %v1058_v23 = vsel %vm405_vm0, %v1016_v20, 0.0  ;;  %v1009_v44 = vmul.f32 %v1762_v14, %v2240_v45  ;;  %v1755_v20 = vunpack.c.h.bf16 %v1828_v2 }
 0x29d   : > { %1059 = vadd.xlane.f32.xlu0 %v1058_v23  ;;  %v1750_v23 = vunpack.c.l.bf16 %v1827_v53 }
 0x29e   : > { %v1037_v21 = vsel %vm405_vm0, %v1009_v44, 0.0  ;;  %v1006_v12 = vmul.f32 %v1755_v20, %v2236_v41  ;;  %v2288_v41 = vpop.f32.mrf.mxu2 }
 0x29f   : > { %v1003_v40 = vmul.f32 %v1750_v23, %v2230_v37 }
 0x2a1   : > { %v998_v28 = vpop.f32.mrf.mxu1  ;;  %v1019_v45 = vsel %vm405_vm0, %v1003_v40, 0.0  ;;  %v1676_v40 = vld [vmem:[%s2040_s5 + $0xc0] sm:$0xff] }
 0x2a2   : > { %v1017_v29 = vmul.f32 %v1778_v24, %v998_v28  ;;  %v1028_v24 = vsel %vm405_vm0, %v1006_v12, 0.0 }
 0x2a3   : > { %1562 = vmatmul.msk.bf16.gmra.mxu2 %vm405_vm0, %v1664_v22 }
 0x2a4   : > { %v1061_v32 = vsel %vm405_vm0, %v1017_v29, 0.0 }
 0x2a5   : > { %1041 = vadd.xlane.f32.xlu0 %v1040_v31  ;;  %1062 = vadd.xlane.f32.xlu2 %v1061_v32 }
 0x2a6   : > { %v2290_v28 = vpop.f32.mrf.mxu2 }
 0x2a9   : > { %v1000_v52 = vpop.f32.mrf.mxu1 }
 0x2aa   : > { %v1018_v55 = vmul.f32 %v1779_v36, %v1000_v52 }
 0x2ac   : > { %v1064_v62 = vsel %vm405_vm0, %v1018_v55, 0.0 }
 0x2ad   : > { %1032 = vadd.xlane.f32.xlu0 %v1031_v59  ;;  %1044 = vadd.xlane.f32.xlu2 %v1043_v61 }
 0x2ae   : > { %1065 = vadd.xlane.f32.xlu1 %v1064_v62  ;;  %v2292_v37 = vpop.f32.mrf.mxu2 }
 0x2b3   : > { %1563 = vmatmul.msk.bf16.gmra.mxu2 %vm405_vm0, %v1665_v16 }
 0x2b5   : > { %1023 = vadd.xlane.f32.xlu0 %v1022_v8  ;;  %1035 = vadd.xlane.f32.xlu2 %v1034_v9 }
 0x2b6   : > { %1047 = vadd.xlane.f32.xlu1 %v1046_v17  ;;  %v2295_v51 = vpop.f32.mrf.mxu2 }
 0x2bd   : > { %1026 = vadd.xlane.f32.xlu2 %v1025_v49 }
 0x2be   : > { %1038 = vadd.xlane.f32.xlu1 %v1037_v21  ;;  %v2301_v61 = vpop.f32.mrf.mxu2 }
 0x2c3   : > { %1564 = vmatmul.msk.bf16.gmra.mxu2 %vm405_vm0, %v1666_v27  ;;  %v1677_v27 = vld [vmem:[%s2040_s5 + $0xc8] sm:$0xff] }
 0x2c6   : > { %1029 = vadd.xlane.f32.xlu1 %v1028_v24  ;;  %v2307_v6 = vpop.f32.mrf.mxu2 }
 0x2ce   : > { %1020 = vadd.xlane.f32.xlu1 %v1019_v45 }
 0x2d3   : > { %1565 = vmatmul.msk.bf16.gmra.mxu2 %vm405_vm0, %v1667_v26 }
 0x2f8   : > { %v1051_v30 = vpop.xlane.xlu0 %1050 }
 0x2f9   : > { %v1077_v62 = vmul.f32 %v2145_v50, %v1051_v30  ;;  %v1678_v30 = vld [vmem:[%s2040_s5 + $0xd0] sm:$0xff] }
 0x300   : > { %v1054_v29 = vpop.xlane.xlu2 %1053 }
 0x301   : > { %v1078_v59 = vmul.f32 %v2139_v46, %v1054_v29 }
 0x308   : > { %v1057_v10 = vpop.xlane.xlu1 %1056 }
 0x309   : > { %v1079_v56 = vmul.f32 %v2133_v42, %v1057_v10 }
 0x310   : > { %v1060_v32 = vpop.xlane.xlu0 %1059 }
 0x311   : > { %v1080_v53 = vmul.f32 %v2127_v39, %v1060_v32 }
 0x316   : > { %v2313_v49 = vpop.f32.mrf.mxu2 }
 0x318   : > { %v1063_v31 = vpop.xlane.xlu2 %1062  ;;  %v1042_v55 = vpop.xlane.xlu0 %1041 }
 0x319   : > { %v1081_v47 = vmul.f32 %v2121_v35, %v1063_v31  ;;  %v1074_v5 = vmul.f32 %v2163_v60, %v1042_v55  ;;  %v1679_v31 = vld [vmem:[%s2040_s5 + $0xd8] sm:$0xff] }
 0x31e   : > { %v718_v24 = vpop.f32.mrf.mxu2 }
 0x320   : > { %v1045_v52 = vpop.xlane.xlu2 %1044  ;;  %v1033_v2 = vpop.xlane.xlu0 %1032 }
 0x321   : > { %v1066_v34 = vpop.xlane.xlu1 %1065  ;;  %v1075_v48 = vmul.f32 %v2157_v57, %v1045_v52  ;;  %v1071_v14 = vmul.f32 %v2181_v11, %v1033_v2 }
 0x322   : > { %v1082_v36 = vmul.f32 %v2116_v33, %v1066_v34  ;;  %v1825_v34 = vld [vmem:[%s2074_s8 + $0x70] sm:$0xff]  }
 0x324   : > { %1083 = vmatpush.msra.mxu3 %v1082_v36  ;;  %v1743_v36 = vunpack.c.h.bf16 %v1825_v34 }
 0x326   : > { %1084 = vmatpush.msra.mxu3 %v1081_v47  ;;  %v721_v45 = vpop.f32.mrf.mxu2 }
 0x328   : > { %1085 = vmatpush.msra.mxu3 %v1080_v53  ;;  %v1036_v43 = vpop.xlane.xlu2 %1035  ;;  %v1024_v20 = vpop.xlane.xlu0 %1023  ;;  %v1824_v53 = vld [vmem:[%s2074_s8 + $0x68] sm:$0xff]  }
 0x329   : > { %v1048_v58 = vpop.xlane.xlu1 %1047  ;;  %v1072_v9 = vmul.f32 %v2175_v7, %v1036_v43  ;;  %v1068_v12 = vmul.f32 %v2195_v19, %v1024_v20 }
 0x32a   : > { %1086 = vmatpush.msra.mxu3 %v1079_v56  ;;  %v1076_v63 = vmul.f32 %v2151_v54, %v1048_v58 }
 0x32c   : > { %1087 = vmatpush.msra.mxu3 %v1078_v59  ;;  %v1739_v59 = vunpack.c.h.bf16 %v1824_v53 }
 0x32e   : > { %1088 = vmatpush.msra.mxu3 %v1077_v62  ;;  %v723_v16 = vpop.f32.mrf.mxu2  ;;  %v1742_v62 = vunpack.c.l.bf16 %v1825_v34 }
 0x330   : > { %1089 = vmatpush.msra.mxu3 %v1076_v63  ;;  %v1027_v17 = vpop.xlane.xlu2 %1026 }
 0x331   : > { %v1039_v4 = vpop.xlane.xlu1 %1038  ;;  %v1069_v21 = vmul.f32 %v2191_v18, %v1027_v17 }
 0x332   : > { %1090 = vmatpush.msra.mxu3 %v1075_v48  ;;  %v1073_v8 = vmul.f32 %v2169_v3, %v1039_v4  ;;  %v1738_v48 = vunpack.c.l.bf16 %v1824_v53  ;;  %v1683_v53 = vld [vmem:[%s2040_s5 + $0xf8] sm:$0xff] }
 0x334   : > { %1091 = vmatpush.msra.mxu3 %v1074_v5  ;;  %v1680_v5 = vld [vmem:[%s2040_s5 + $0xe0] sm:$0xff] }
 0x336   : > { %1092 = vmatpush.msra.mxu3 %v1073_v8  ;;  %v726_v26 = vpop.f32.mrf.mxu2 }
 0x337   : > { %v751_v17 = vmul.f32 %v1738_v48, %v726_v26 }
 0x338   : > { %1093 = vmatpush.msra.mxu3 %v1072_v9 }
 0x339   : > { %v1030_v38 = vpop.xlane.xlu1 %1029 }
 0x33a   : > { %v1070_v44 = vmul.f32 %v2186_v15, %v1030_v38  ;;  %1094 = vmatpush.msra.mxu3 %v1071_v14  ;;  %v1823_v14 = vld [vmem:[%s2074_s8 + $0x60] sm:$0xff]  }
 0x33b   : > { %v1735_v38 = vunpack.c.h.bf16 %v1823_v14 }
 0x33c   : > { %1095 = vmatpush.msra.mxu3 %v1070_v44 }
 0x33e   : > { %1096 = vmatpush.msra.mxu3 %v1069_v21  ;;  %v728_v29 = vpop.f32.mrf.mxu2  ;;  %v1822_v21 = vld [vmem:[%s2074_s8 + $0x58] sm:$0xff]  }
 0x33f   : > { %v752_v4 = vmul.f32 %v1739_v59, %v728_v29  ;;  %v1821_v29 = vld [vmem:[%s2074_s8 + $0x50] sm:$0xff]   ;;  %v1730_v26 = vunpack.c.l.bf16 %v1822_v21 }
 0x340   : > { %1097 = vmatpush.msra.mxu3 %v1068_v12  ;;  %v1734_v12 = vunpack.c.l.bf16 %v1823_v14 }
 0x341   : > { %v1021_v22 = vpop.xlane.xlu1 %1020  ;;  %v790_v20 = vsel %vm405_vm0, %v752_v4, 0.0  ;;  %v747_v34 = vmul.f32 %v1730_v26, %v2313_v49 }
 0x342   : > { %v1067_v23 = vmul.f32 %v2202_v25, %v1021_v22  ;;  %v787_v22 = vsel %vm405_vm0, %v751_v17, 0.0 }
 0x344   : > { %1098 = vmatpush.msra.mxu3 %v1067_v23  ;;  %v1731_v23 = vunpack.c.h.bf16 %v1822_v21 }
 0x345   : > { %1099 = vmatmul.f32.vlgmr.msra.gmra.mxu3 %v1949_v13 }
 0x346   : > { %1222 = vmatpush.bf16.msrb.mxu3 %v2021_v0  ;;  %v731_v10 = vpop.f32.mrf.mxu2 }
 0x347   : > { %v753_v8 = vmul.f32 %v1742_v62, %v731_v10 }
 0x349   : > { %v793_v44 = vsel %vm405_vm0, %v753_v8, 0.0 }
 0x34a   : > { %1223 = vmatpush.bf16.msrb.mxu3 %v2028_v1  ;;  %v1826_v1 = vld [vmem:[%s2074_s8 + $0x78] sm:$0xff]  }
 0x34b   : > { %v1747_v47 = vunpack.c.h.bf16 %v1826_v1  ;;  %v1746_v52 = vunpack.c.l.bf16 %v1826_v1  ;;  %v1681_v1 = vld [vmem:[%s2040_s5 + $0xe8] sm:$0xff] }
 0x34d   : > { %1638 = vmatmul.msk.bf16.vlgmr.msrb.gmra.mxu3 %vm405_vm0, %v1676_v40  ;;  %v750_v40 = vmul.f32 %v1735_v38, %v723_v16 }
 0x34e   : > { %v733_v0 = vpop.f32.mrf.mxu2 }
 0x34f   : > { %v754_v56 = vmul.f32 %v1743_v36, %v733_v0  ;;  %v784_v10 = vsel %vm405_vm0, %v750_v40, 0.0  ;;  %v1727_v0 = vunpack.c.h.bf16 %v1821_v29  ;;  %v775_v36 = vsel %vm405_vm0, %v747_v34, 0.0 }
 0x351   : > { %v796_v2 = vsel %vm405_vm0, %v754_v56, 0.0 }
 0x352   : > { %797 = vadd.xlane.f32.xlu1 %v796_v2 }
 0x356   : > { %v736_v32 = vpop.f32.mrf.mxu2 }
 0x357   : > { %v755_v63 = vmul.f32 %v1746_v52, %v736_v32  ;;  %v1726_v32 = vunpack.c.l.bf16 %v1821_v29  ;;  %v1682_v52 = vld [vmem:[%s2040_s5 + $0xf0] sm:$0xff]  ;;  %v1839_v29 = vld [vmem:[%s2074_s8 + $0xe0] sm:$0xff]  }
 0x359   : > { %v799_v9 = vsel %vm405_vm0, %v755_v63, 0.0 }
 0x35a   : > { %800 = vadd.xlane.f32.xlu0 %v799_v9  ;;  %791 = vadd.xlane.f32.xlu1 %v790_v20 }
 0x35d   : > { %1639 = vmatmul.msk.bf16.gmra.mxu3 %vm405_vm0, %v1677_v27  ;;  %v749_v27 = vmul.f32 %v1734_v12, %v721_v45  ;;  %v746_v45 = vmul.f32 %v1727_v0, %v2307_v6 }
 0x35e   : > { %v738_v55 = vpop.f32.mrf.mxu2 }
 0x35f   : > { %v756_v58 = vmul.f32 %v1747_v47, %v738_v55  ;;  %v772_v47 = vsel %vm405_vm0, %v746_v45, 0.0 }
 0x361   : > { %v802_v43 = vsel %vm405_vm0, %v756_v58, 0.0 }
 0x362   : > { %803 = vadd.xlane.f32.xlu2 %v802_v43  ;;  %788 = vadd.xlane.f32.xlu0 %v787_v22  ;;  %v1838_v43 = vld [vmem:[%s2074_s8 + $0xd8] sm:$0xff]  }
 0x363   : > { %v1794_v2 = vunpack.c.l.bf16 %v1838_v43  ;;  %v1795_v20 = vunpack.c.h.bf16 %v1838_v43 }
 0x36a   : > { %794 = vadd.xlane.f32.xlu2 %v793_v44 }
 0x36d   : > { %1640 = vmatmul.msk.bf16.gmra.mxu3 %vm405_vm0, %v1678_v30  ;;  %v748_v30 = vmul.f32 %v1731_v23, %v718_v24  ;;  %v745_v24 = vmul.f32 %v1726_v32, %v2301_v61 }
 0x36f   : > { %v778_v16 = vsel %vm405_vm0, %v748_v30, 0.0  ;;  %v769_v49 = vsel %vm405_vm0, %v745_v24, 0.0 }
 0x370   : > { %779 = vadd.xlane.f32.xlu0 %v778_v16 }
 0x372   : > { %785 = vadd.xlane.f32.xlu2 %v784_v10 }
 0x378   : > { %770 = vadd.xlane.f32.xlu0 %v769_v49 }
 0x37a   : > { %776 = vadd.xlane.f32.xlu2 %v775_v36 }
 0x37d   : > { %1641 = vmatmul.msk.bf16.gmra.mxu3 %vm405_vm0, %v1679_v31  ;;  %v781_v31 = vsel %vm405_vm0, %v749_v27, 0.0 }
 0x37e   : > { %782 = vadd.xlane.f32.xlu1 %v781_v31  ;;  %v1798_v31 = vunpack.c.l.bf16 %v1839_v29 }
 0x386   : > { %773 = vadd.xlane.f32.xlu1 %v772_v47 }
 0x38d   : > { %1642 = vmatmul.msk.bf16.gmra.mxu3 %vm405_vm0, %v1680_v5 }
 0x39d   : > { %1643 = vmatmul.msk.bf16.gmra.mxu3 %vm405_vm0, %v1681_v1 }
 0x3ad   : > { %1644 = vmatmul.msk.bf16.gmra.mxu3 %vm405_vm0, %v1682_v52 }
 0x3bd   : > { %1645 = vmatmul.msk.bf16.gmra.mxu3 %vm405_vm0, %v1683_v53  ;;  %v1799_v53 = vunpack.c.h.bf16 %v1839_v29 }
 0x3c5   : > { %v798_v48 = vpop.xlane.xlu1 %797 }
 0x3c6   : > { %v818_v44 = vmul.f32 %v2127_v39, %v798_v48 }
 0x3c8   : > { %v1100_v6 = vpop.f32.mrf.mxu3 }
 0x3c9   : > { %1103 = vst [vmem:[%s2227_s11 + $0x2] sm:$0x1] %v1100_v6 }
 0x3cd   : > { %v801_v4 = vpop.xlane.xlu0 %800  ;;  %v792_v38 = vpop.xlane.xlu1 %791 }
 0x3ce   : > { %v819_v17 = vmul.f32 %v2121_v35, %v801_v4  ;;  %v816_v23 = vmul.f32 %v2139_v46, %v792_v38 }
 0x3d0   : > { %v2359_v61 = vpop.f32.mrf.mxu3 }
 0x3d5   : > { %v804_v63 = vpop.xlane.xlu2 %803  ;;  %v789_v21 = vpop.xlane.xlu0 %788 }
 0x3d6   : > { %v820_v8 = vmul.f32 %v2116_v33, %v804_v63  ;;  %v815_v26 = vmul.f32 %v2145_v50, %v789_v21  ;;  %v1841_v21 = vld [vmem:[%s2074_s8 + $0xf0] sm:$0xff]  }
 0x3d7   : > { %v1807_v29 = vunpack.c.h.bf16 %v1841_v21 }
 0x3d8   : > { %v2361_v55 = vpop.f32.mrf.mxu3  ;;  %821 = vmatpush.msrb.mxu2 %v820_v8 }
 0x3da   : > { %822 = vmatpush.msrb.mxu2 %v819_v17 }
 0x3dc   : > { %823 = vmatpush.msrb.mxu2 %v818_v44 }
 0x3dd   : > { %v795_v14 = vpop.xlane.xlu2 %794 }
 0x3de   : > { %v817_v12 = vmul.f32 %v2133_v42, %v795_v14 }
 0x3e0   : > { %v2363_v56 = vpop.f32.mrf.mxu3  ;;  %824 = vmatpush.msrb.mxu2 %v817_v12 }
 0x3e2   : > { %825 = vmatpush.msrb.mxu2 %v816_v23 }
 0x3e3   : > { %v780_v32 = vpop.xlane.xlu0 %779 }
 0x3e4   : > { %826 = vmatpush.msrb.mxu2 %v815_v26  ;;  %v812_v16 = vmul.f32 %v2163_v60, %v780_v32  ;;  %v1820_v26 = vld [vmem:[%s2074_s8 + $0x48] sm:$0xff]  }
 0x3e5   : > { %v786_v27 = vpop.xlane.xlu2 %785 }
 0x3e6   : > { %v814_v0 = vmul.f32 %v2151_v54, %v786_v27 }
 0x3e8   : > { %v2365_v58 = vpop.f32.mrf.mxu3  ;;  %827 = vmatpush.msrb.mxu2 %v814_v0  ;;  %v1842_v0 = vld [vmem:[%s2074_s8 + $0xf8] sm:$0xff]  }
 0x3eb   : > { %v771_v6 = vpop.xlane.xlu0 %770 }
 0x3ec   : > { %v809_v63 = vmul.f32 %v2181_v11, %v771_v6 }
 0x3ed   : > { %v777_v24 = vpop.xlane.xlu2 %776 }
 0x3ee   : > { %v811_v36 = vmul.f32 %v2169_v3, %v777_v24 }
 0x3f0   : > { %v2367_v59 = vpop.f32.mrf.mxu3 }
 0x3f1   : > { %v783_v10 = vpop.xlane.xlu1 %782 }
 0x3f2   : > { %v813_v34 = vmul.f32 %v2157_v57, %v783_v10 }
 0x3f4   : > { %828 = vmatpush.msrb.mxu2 %v813_v34  ;;  %v1810_v34 = vunpack.c.l.bf16 %v1842_v0 }
 0x3f6   : > { %829 = vmatpush.msrb.mxu2 %v812_v16  ;;  %v1837_v16 = vld [vmem:[%s2074_s8 + $0xd0] sm:$0xff]  }
 0x3f8   : > { %v2369_v62 = vpop.f32.mrf.mxu3  ;;  %830 = vmatpush.msrb.mxu2 %v811_v36  ;;  %v1723_v36 = vunpack.c.h.bf16 %v1820_v26 }
 0x3f9   : > { %v774_v49 = vpop.xlane.xlu1 %773 }
 0x3fa   : > { %v810_v52 = vmul.f32 %v2175_v7, %v774_v49  ;;  %v744_v6 = vmul.f32 %v1723_v36, %v2295_v51 }
 0x3fc   : > { %831 = vmatpush.msrb.mxu2 %v810_v52 }
 0x3fe   : > { %832 = vmatpush.msrb.mxu2 %v809_v63 }
 0x400   : > { %v1240_v5 = vpop.f32.mrf.mxu3 }
 0x401   : > { %v2373_v9 = vmul.f32 %v1794_v2, %v1240_v5  ;;  %v1840_v2 = vld [vmem:[%s2074_s8 + $0xe8] sm:$0xff]  }
 0x402   : > { %v1802_v5 = vunpack.c.l.bf16 %v1840_v2  ;;  %v1803_v38 = vunpack.c.h.bf16 %v1840_v2  ;;  %v766_v2 = vsel %vm405_vm0, %v744_v6, 0.0 }
 0x408   : > { %v1242_v22 = vpop.f32.mrf.mxu3 }
 0x409   : > { %v1272_v40 = vmul.f32 %v1795_v20, %v1242_v22  ;;  %v1806_v22 = vunpack.c.l.bf16 %v1841_v21 }
 0x40b   : > { %v1302_v30 = vsel %vm405_vm0, %v1272_v40, 0.0 }
 0x40c   : > { %1303 = vadd.xlane.f32.xlu1 %v1302_v30 }
 0x410   : > { %v1245_v1 = vpop.f32.mrf.mxu3 }
 0x411   : > { %v1273_v45 = vmul.f32 %v1798_v31, %v1245_v1  ;;  %v1722_v31 = vunpack.c.l.bf16 %v1820_v26 }
 0x413   : > { %v1305_v47 = vsel %vm405_vm0, %v1273_v45, 0.0  ;;  %v743_v1 = vmul.f32 %v1722_v31, %v2292_v37 }
 0x414   : > { %1306 = vadd.xlane.f32.xlu2 %v1305_v47  ;;  %v1790_v47 = vunpack.c.l.bf16 %v1837_v16 }
 0x415   : > { %v763_v49 = vsel %vm405_vm0, %v743_v1, 0.0 }
 0x416   : > { %v1269_v63 = vmul.f32 %v1790_v47, %v2367_v59  ;;  %v1819_v59 = vld [vmem:[%s2074_s8 + $0x40] sm:$0xff]  }
 0x417   : > { %v1719_v21 = vunpack.c.h.bf16 %v1819_v59 }
 0x418   : > { %v1247_v43 = vpop.f32.mrf.mxu3 }
 0x419   : > { %v1274_v48 = vmul.f32 %v1799_v53, %v1247_v43  ;;  %v1811_v53 = vunpack.c.h.bf16 %v1842_v0  ;;  %v1836_v43 = vld [vmem:[%s2074_s8 + $0xc8] sm:$0xff]  }
 0x41b   : > { %v1308_v4 = vsel %vm405_vm0, %v1274_v48, 0.0 }
 0x41c   : > { %1309 = vadd.xlane.f32.xlu0 %v1308_v4  ;;  %v1786_v4 = vunpack.c.l.bf16 %v1836_v43 }
 0x420   : > { %v1250_v8 = vpop.f32.mrf.mxu3 }
 0x421   : > { %v1275_v14 = vmul.f32 %v1802_v5, %v1250_v8  ;;  %v1791_v5 = vunpack.c.h.bf16 %v1837_v16  ;;  %v1293_v8 = vsel %vm405_vm0, %v1269_v63, 0.0 }
 0x423   : > { %v1311_v17 = vsel %vm405_vm0, %v1275_v14, 0.0  ;;  %v1270_v51 = vmul.f32 %v1791_v5, %v2369_v62 }
 0x424   : > { %1312 = vadd.xlane.f32.xlu1 %v1311_v17  ;;  %v1267_v17 = vmul.f32 %v1786_v4, %v2363_v56  ;;  %v1835_v56 = vld [vmem:[%s2074_s8 + $0xc0] sm:$0xff]  }
 0x428   : > { %v1252_v44 = vpop.f32.mrf.mxu3 }
 0x429   : > { %v1276_v20 = vmul.f32 %v1803_v38, %v1252_v44  ;;  %v1718_v38 = vunpack.c.l.bf16 %v1819_v59  ;;  %v1287_v44 = vsel %vm405_vm0, %v1267_v17, 0.0 }
 0x42b   : > { %v1314_v12 = vsel %vm405_vm0, %v1276_v20, 0.0  ;;  %v1296_v20 = vsel %vm405_vm0, %v1270_v51, 0.0 }
 0x42c   : > { %1315 = vadd.xlane.f32.xlu2 %v1314_v12  ;;  %v1299_v12 = vsel %vm405_vm0, %v2373_v9, 0.0 }
 0x430   : > { %v1255_v23 = vpop.f32.mrf.mxu3 }
 0x431   : > { %v1277_v40 = vmul.f32 %v1806_v22, %v1255_v23  ;;  %v741_v22 = vmul.f32 %v1718_v38, %v2288_v41  ;;  %v742_v23 = vmul.f32 %v1719_v21, %v2290_v28 }
 0x433   : > { %v1317_v27 = vsel %vm405_vm0, %v1277_v40, 0.0  ;;  %v1783_v40 = vunpack.c.h.bf16 %v1835_v56  ;;  %v757_v62 = vsel %vm405_vm0, %v741_v22, 0.0 }
 0x434   : > { %1318 = vadd.xlane.f32.xlu0 %v1317_v27  ;;  %v1787_v27 = vunpack.c.h.bf16 %v1836_v43 }
 0x435   : > { %v1266_v26 = vmul.f32 %v1783_v40, %v2361_v55 }
 0x437   : > { %v1284_v9 = vsel %vm405_vm0, %v1266_v26, 0.0 }
 0x438   : > { %v1257_v30 = vpop.f32.mrf.mxu3 }
 0x439   : > { %v1278_v10 = vmul.f32 %v1807_v29, %v1257_v30  ;;  %v760_v29 = vsel %vm405_vm0, %v742_v23, 0.0  ;;  %v1268_v30 = vmul.f32 %v1787_v27, %v2365_v58 }
 0x43b   : > { %v1320_v32 = vsel %vm405_vm0, %v1278_v10, 0.0  ;;  %v1782_v10 = vunpack.c.l.bf16 %v1835_v56  ;;  %v1290_v41 = vsel %vm405_vm0, %v1268_v30, 0.0 }
 0x43c   : > { %1321 = vadd.xlane.f32.xlu1 %v1320_v32 }
 0x43d   : > { %v1265_v28 = vmul.f32 %v1782_v10, %v2359_v61 }
 0x43f   : > { %v1281_v0 = vsel %vm405_vm0, %v1265_v28, 0.0 }
 0x440   : > { %v1260_v45 = vpop.f32.mrf.mxu3 }
 0x441   : > { %v1279_v24 = vmul.f32 %v1810_v34, %v1260_v45 }
 0x443   : > { %v1323_v52 = vsel %vm405_vm0, %v1279_v24, 0.0 }
 0x444   : > { %764 = vadd.xlane.f32.xlu1 %v763_v49  ;;  %1324 = vadd.xlane.f32.xlu2 %v1323_v52 }
 0x448   : > { %v1262_v48 = vpop.f32.mrf.mxu3 }
 0x449   : > { %v1280_v37 = vmul.f32 %v1811_v53, %v1262_v48 }
 0x44b   : > { %v1326_v14 = vsel %vm405_vm0, %v1280_v37, 0.0 }
 0x44c   : > { %1294 = vadd.xlane.f32.xlu1 %v1293_v8  ;;  %767 = vadd.xlane.f32.xlu2 %v766_v2 }
 0x44d   : > { %1327 = vadd.xlane.f32.xlu0 %v1326_v14 }
 0x454   : > { %1288 = vadd.xlane.f32.xlu1 %v1287_v44  ;;  %1297 = vadd.xlane.f32.xlu2 %v1296_v20 }
 0x455   : > { %1300 = vadd.xlane.f32.xlu0 %v1299_v12 }
 0x45c   : > { %758 = vadd.xlane.f32.xlu2 %v757_v62 }
 0x45d   : > { %761 = vadd.xlane.f32.xlu0 %v760_v29 }
 0x464   : > { %1285 = vadd.xlane.f32.xlu2 %v1284_v9 }
 0x465   : > { %1291 = vadd.xlane.f32.xlu0 %v1290_v41 }
 0x46d   : > { %1282 = vadd.xlane.f32.xlu0 %v1281_v0 }
 0x47f   : > { %v1304_v31 = vpop.xlane.xlu1 %1303 }
 0x487   : > { %v1307_v32 = vpop.xlane.xlu2 %1306 }
 0x488   : > { %v1337_v4 = vmul.f32 %v2157_v57, %v1307_v32 }
 0x48f   : > { %v1310_v16 = vpop.xlane.xlu0 %1309 }
 0x490   : > { %v1338_v2 = vmul.f32 %v2151_v54, %v1310_v16 }
 0x497   : > { %v1313_v34 = vpop.xlane.xlu1 %1312 }
 0x49f   : > { %v1316_v1 = vpop.xlane.xlu2 %1315 }
 0x4a0   : > { %v1340_v37 = vmul.f32 %v2139_v46, %v1316_v1 }
 0x4a7   : > { %v1319_v58 = vpop.xlane.xlu0 %1318 }
 0x4a8   : > { %v1341_v63 = vmul.f32 %v2133_v42, %v1319_v58  ;;  %v1336_v42 = vmul.f32 %v2163_v60, %v1304_v31 }
 0x4af   : > { %v1322_v55 = vpop.xlane.xlu1 %1321 }
 0x4b0   : > { %v1342_v6 = vmul.f32 %v2127_v39, %v1322_v55 }
 0x4b7   : > { %v1325_v45 = vpop.xlane.xlu2 %1324  ;;  %v765_v24 = vpop.xlane.xlu1 %764 }
 0x4b8   : > { %v807_v61 = vmul.f32 %v2191_v18, %v765_v24  ;;  %v1343_v53 = vmul.f32 %v2121_v35, %v1325_v45 }
 0x4bf   : > { %v768_v36 = vpop.xlane.xlu2 %767  ;;  %v1295_v35 = vpop.xlane.xlu1 %1294 }
 0x4c0   : > { %v808_v47 = vmul.f32 %v2186_v15, %v768_v36  ;;  %v1328_v49 = vpop.xlane.xlu0 %1327  ;;  %v1333_v54 = vmul.f32 %v2181_v11, %v1295_v35 }
 0x4c1   : > { %v1344_v52 = vmul.f32 %v2116_v33, %v1328_v49  ;;  %v1339_v33 = vmul.f32 %v2145_v50, %v1313_v34 }
 0x4c2   : > { %833 = vmatpush.msrb.mxu2 %v808_v47 }
 0x4c3   : > { %1345 = vmatpush.msrb.mxu0 %v1344_v52 }
 0x4c4   : > { %834 = vmatpush.msrb.mxu2 %v807_v61 }
 0x4c5   : > { %1346 = vmatpush.msrb.mxu0 %v1343_v53 }
 0x4c7   : > { %1347 = vmatpush.msrb.mxu0 %v1342_v6  ;;  %v1298_v43 = vpop.xlane.xlu2 %1297  ;;  %v1289_v57 = vpop.xlane.xlu1 %1288 }
 0x4c8   : > { %v1301_v48 = vpop.xlane.xlu0 %1300  ;;  %v1334_v50 = vmul.f32 %v2175_v7, %v1298_v43  ;;  %v1331_v51 = vmul.f32 %v2191_v18, %v1289_v57 }
 0x4c9   : > { %1348 = vmatpush.msrb.mxu0 %v1341_v63  ;;  %v1335_v46 = vmul.f32 %v2169_v3, %v1301_v48 }
 0x4cb   : > { %1349 = vmatpush.msrb.mxu0 %v1340_v37 }
 0x4cd   : > { %1350 = vmatpush.msrb.mxu0 %v1339_v33 }
 0x4cf   : > { %1351 = vmatpush.msrb.mxu0 %v1338_v2  ;;  %v759_v39 = vpop.xlane.xlu2 %758 }
 0x4d0   : > { %v762_v5 = vpop.xlane.xlu0 %761  ;;  %v805_v14 = vmul.f32 %v2202_v25, %v759_v39 }
 0x4d1   : > { %v806_v8 = vmul.f32 %v2195_v19, %v762_v5  ;;  %1352 = vmatpush.msrb.mxu0 %v1337_v4 }
 0x4d3   : > { %835 = vmatpush.msrb.mxu2 %v806_v8  ;;  %1353 = vmatpush.msrb.mxu0 %v1336_v42 }
 0x4d5   : > { %836 = vmatpush.msrb.mxu2 %v805_v14  ;;  %1354 = vmatpush.msrb.mxu0 %v1335_v46 }
 0x4d6   : > { %837 = vmatmul.f32.vlgmr.msrb.gmra.mxu2 %v1949_v13 }
 0x4d7   : > { %1355 = vmatpush.msrb.mxu0 %v1334_v50  ;;  %v1286_v3 = vpop.xlane.xlu2 %1285 }
 0x4d8   : > { %v1292_v60 = vpop.xlane.xlu0 %1291  ;;  %v1330_v7 = vmul.f32 %v2195_v19, %v1286_v3 }
 0x4d9   : > { %v1332_v17 = vmul.f32 %v2186_v15, %v1292_v60  ;;  %1356 = vmatpush.msrb.mxu0 %v1333_v54 }
 0x4db   : > { %1357 = vmatpush.msrb.mxu0 %v1332_v17 }
 0x4dd   : > { %1358 = vmatpush.msrb.mxu0 %v1331_v51 }
 0x4df   : > { %1359 = vmatpush.msrb.mxu0 %v1330_v7 }
 0x4e0   : > { %v1283_v11 = vpop.xlane.xlu0 %1282 }
 0x4e1   : > { %v1329_v59 = vmul.f32 %v2202_v25, %v1283_v11 }
 0x4e3   : > { %1360 = vmatpush.msrb.mxu0 %v1329_v59 }
 0x4e4   : > { %1361 = vmatmul.f32.vlgmr.msrb.gmra.mxu0 %v1949_v13 }
 0x559   : > { %v838_v15 = vpop.f32.mrf.mxu2 }
 0x55a   : > { %841 = vst [vmem:[%s2227_s11 + $0x1] sm:$0x1] %v838_v15 }
 0x561   : > { %v1362_v18 = vpop.f32.mrf.mxu0 }
 0x562   : > { %1365 = vst [vmem:[%s2227_s11 + $0x3] sm:$0x1] %v1362_v18 }
 0x563   : > { %1911 = shalt.err (!%p1908_p3)
}
 0x564   : > { %1843 = dma.vmem_to_hbm [thread:$0]  (%p2008_p5), %s1380_s25, 64, %s1382_s26, %s1367_s27  }
 0x565 PF: > { %p1849_p4 = scmp.ge.s32.totalorder %s1946_s15, 2  ;;  %s1393_s7 = sand.u32 1, %s1934_s12  }
 0x566   : > { %s1394_s8 = scalar_lea.sflag [#allocation3], %s1393_s7 }
 0x567   : > { %p1846_p7 = pnand %p1849_p4, %p2012_p6 }
 0x569   : > { %p1847_p8 = pneg %p1846_p7 }
 0x56b   : > { %1929 = dma.done.wait (%p1847_p8), %s1394_s8, 64  }
 0x56c   : > { %1931 = vsyncadd (%p1847_p8), %s1394_s8, 4294967232  ;;  %p13_p9 = scmp.ge.s32.totalorder %s1995_s18, 6   ;;  %s2490_s12 = smov %s1938_s13 }
 0x56d   : > { %s2491_s13 = smov %s1942_s14  ;;  %s2492_s14 = smov %s2006_s21 }
 0x56e   : > { %s2493_s15 = smov %s1995_s18  ;;  %15 = sbr.rel (!%p13_p9) target bundleno = 3 (0x3), region = 70 }
 0x573   :  { %1400 = vsyncpa [#allocation3], 1 }
 0x574   :  { %1402 = vsyncpa [#allocation3 + $0x1], 1 }

</bundles_post_ra>
